<compile_context>
chip_gen: v5e
topology: v5e:2x2
jax: 0.10.0
libtpu: 0.0.40
codegen_flags: <defaults>
</compile_context>

<pallas_src>
import functools

import jax
import jax.numpy as jnp
from jax.experimental import pallas as pl
from jax.experimental.pallas import tpu as pltpu


def _round_up(x, m):
    return ((x + m - 1) // m) * m


def _pick_tile(size, cap, granule=128):
    """Largest multiple of `granule` that divides `size` and is <= cap."""
    cap = max(granule, min(cap, size))
    best = granule
    for cand in range(granule, cap + 1, granule):
        if size % cand == 0:
            best = cand
    return best


def _gcn_kernel(adj_ref, x_ref, w_ref, b_ref, out_ref, acc_ref, *,
                tk, x_resident, compute_dtype):
    """One (row-tile i, contraction-tile k) step of out = (adj @ x) @ W + b."""
    k = pl.program_id(1)

    # adj streams in its HBM dtype; cast the tile on-chip (cheap VPU op,
    # hidden under the tile DMA).
    a = adj_ref[...].astype(compute_dtype)

    if x_resident:
        start = pl.multiple_of(k * tk, 128)
        xk = x_ref[pl.ds(start, tk), :]       # slice the VMEM-resident x
    else:
        xk = x_ref[...]                       # per-k streamed slab

    prod = jnp.dot(a, xk, preferred_element_type=jnp.float32)

    @pl.when(k == 0)
    def _():
        acc_ref[...] = prod                   # direct write: no zero-init pass

    @pl.when(k != 0)
    def _():
        acc_ref[...] += prod

    @pl.when(k == pl.num_programs(1) - 1)
    def _():
        # Small projection through W (bf16 MXU path) + bias, once per row tile.
        out = jnp.dot(acc_ref[...].astype(compute_dtype), w_ref[...],
                      preferred_element_type=jnp.float32)
        out_ref[...] = (out + b_ref[...]).astype(out_ref.dtype)


def gcn_forward(x, weight, adj, bias=None, *,
                tm_target=1024, tk_target=2048,
                compute_dtype=jnp.bfloat16,
                x_resident_max_bytes=8 << 20,
                min_pallas_nodes=256):
    """output = adj @ (x @ weight) + bias, computed as (adj @ x) @ weight.

    The reordering is mathematically identical to the torch module. With the
    default compute_dtype=bf16 the big adj/x streams are bf16-rounded (pass
    compute_dtype=jnp.float32 for full f32 semantics at ~2x the bandwidth).
    """
    n, f_in = x.shape
    f_out = weight.shape[1]
    assert adj.shape == (n, n)
    out_dtype = x.dtype

    # --- Small-problem fallback: padding + launch overhead dwarfs the work.
    if n < min_pallas_nodes:
        support = x.astype(jnp.float32) @ weight.astype(jnp.float32)
        out = adj.astype(jnp.float32) @ support
        if bias is not None:
            out = out + bias.astype(jnp.float32)
        return out.astype(out_dtype)

    # --- Lane-dense padding only (128 granule), never up to tile multiples.
    f_in_p = _round_up(f_in, 128)
    f_out_p = _round_up(f_out, 128)
    n_pad = _round_up(n, 128)

    # adj: dominant HBM stream — avoid any extra materialization pass.
    if n_pad == n:
        adj_p = adj                           # zero-copy; cast per-tile in-kernel
    else:
        # Copy is unavoidable for ragged N, so fold the compute-dtype cast in.
        adj_p = (jnp.zeros((n_pad, n_pad), compute_dtype)
                 .at[:n, :n].set(adj.astype(compute_dtype)))

    # x / W / bias are tiny next to adj: pad + cast in the wrapper.
    x_p = (jnp.zeros((n_pad, f_in_p), compute_dtype)
           .at[:n, :f_in].set(x.astype(compute_dtype)))
    w_p = (jnp.zeros((f_in_p, f_out_p), compute_dtype)
           .at[:f_in, :f_out].set(weight.astype(compute_dtype)))
    b_p = jnp.zeros((1, f_out_p), jnp.float32)
    if bias is not None:
        b_p = b_p.at[0, :f_out].set(bias.astype(jnp.float32))

    adj_itemsize = jnp.dtype(adj_p.dtype).itemsize
    c_itemsize = jnp.dtype(compute_dtype).itemsize

    # Keep the whole (padded) x VMEM-resident when small: removes x
    # re-streaming (one fetch total instead of one per row tile).
    x_resident = n_pad * f_in_p * c_itemsize <= x_resident_max_bytes

    # --- Tile selection: multiples of 128 that exactly divide n_pad (no
    # ragged / wasted tiles), >=2 row tiles for v7x megacore, live VMEM kept
    # under a conservative budget that fits v5e/v6e/v7x.
    vmem_budget = 40 << 20
    tm_cap = min(tm_target, n_pad // 2) if n_pad >= 256 else tm_target
    tk_cap = tk_target
    while True:
        tm = _pick_tile(n_pad, tm_cap)
        tk = _pick_tile(n_pad, tk_cap)
        x_bytes = (n_pad * f_in_p * c_itemsize if x_resident
                   else 2 * tk * f_in_p * c_itemsize)
        live = (2 * tm * tk * adj_itemsize            # adj double buffer
                + x_bytes                              # x (resident or 2 slabs)
                + 2 * f_in_p * f_out_p * c_itemsize    # W
                + 2 * f_out_p * 4                      # bias
                + 2 * tm * f_out_p * 4                 # out double buffer
                + tm * f_in_p * 4)                     # f32 accumulator scratch
        if live <= vmem_budget or (tm == 128 and tk == 128):
            break
        if tk >= tm and tk > 128:
            tk_cap = max(128, tk // 2)
        elif tm > 128:
            tm_cap = max(128, tm // 2)
        else:
            tk_cap = max(128, tk // 2)

    grid = (n_pad // tm, n_pad // tk)

    x_spec = (pl.BlockSpec((n_pad, f_in_p), lambda i, k: (0, 0)) if x_resident
              else pl.BlockSpec((tk, f_in_p), lambda i, k: (k, 0)))

    kernel = functools.partial(_gcn_kernel, tk=tk, x_resident=x_resident,
                               compute_dtype=compute_dtype)

    # Size the scoped VMEM limit to ~1.5x actual need (not physical VMEM);
    # stays below v7x's 64 MiB physical per-TC VMEM.
    vmem_limit = int(max(32 << 20, min(live + live // 2, 60 << 20)))

    out_p = pl.pallas_call(
        kernel,
        out_shape=jax.ShapeDtypeStruct((n_pad, f_out_p), jnp.float32),
        grid_spec=pltpu.PrefetchScalarGridSpec(
            num_scalar_prefetch=0,
            grid=grid,
            in_specs=[
                # adj tile: streamed & double-buffered, dominant HBM traffic.
                pl.BlockSpec((tm, tk), lambda i, k: (i, k)),
                # x: whole-resident (constant index_map) or per-k slab.
                x_spec,
                # W / bias: constant index_map -> fetched once, VMEM-resident.
                pl.BlockSpec((f_in_p, f_out_p), lambda i, k: (0, 0)),
                pl.BlockSpec((1, f_out_p), lambda i, k: (0, 0)),
            ],
            # Lane-dense (128-multiple) output tile, written once per row tile.
            out_specs=pl.BlockSpec((tm, f_out_p), lambda i, k: (i, 0)),
            scratch_shapes=[pltpu.VMEM((tm, f_in_p), jnp.float32)],
        ),
        compiler_params=pltpu.CompilerParams(
            dimension_semantics=("parallel", "arbitrary"),
            vmem_limit_bytes=vmem_limit,
        ),
    )(adj_p, x_p, w_p, b_p)

    # TODO(synk): if F_in > F_out for some config, the support-first ordering
    # adj @ (x @ W) would be cheaper; this path always uses (adj @ x) @ W.
    return out_p[:n, :f_out].astype(out_dtype)


def xavier_uniform(key, fan_in, fan_out, dtype=jnp.float32):
    # torch.nn.init.xavier_uniform_ with gain=1
    limit = (6.0 / (fan_in + fan_out)) ** 0.5
    return jax.random.uniform(
        key, (fan_in, fan_out), dtype=dtype, minval=-limit, maxval=limit
    )


if __name__ == "__main__":
    # Moderate shapes: large enough to exercise the Pallas path (>=256 nodes),
    # non-power-of-two N to exercise the divisor-based tile selection.
    num_nodes = 384
    in_features = 48
    out_features = 96

    key = jax.random.PRNGKey(0)
    kx, kadj, kw, kb = jax.random.split(key, 4)

    weight = xavier_uniform(kw, in_features, out_features)
    bias = 0.1 * jax.random.normal(kb, (out_features,), dtype=jnp.float32)
    x = jax.random.normal(kx, (num_nodes, in_features), dtype=jnp.float32)
    adj = jax.random.uniform(kadj, (num_nodes, num_nodes), dtype=jnp.float32)

    # Pallas path (VMEM-resident x).
    out = gcn_forward(x, weight, adj, bias)
    jax.block_until_ready(out)
    assert out.shape == (num_nodes, out_features)

    # Pallas path (streamed x slabs) — validates the other kernel variant.
    out_stream = gcn_forward(x, weight, adj, bias, x_resident_max_bytes=0)
    jax.block_until_ready(out_stream)

    # Matched-path reference: same bf16 rounding / ordering as the kernel,
    # f32 accumulation.
    adj_b = adj.astype(jnp.bfloat16).astype(jnp.float32)
    x_b = x.astype(jnp.bfloat16).astype(jnp.float32)
    w_b = weight.astype(jnp.bfloat16).astype(jnp.float32)
    supp_b = (adj_b @ x_b).astype(jnp.bfloat16).astype(jnp.float32)
    ref_bf16 = supp_b @ w_b + bias
    assert jnp.allclose(out, ref_bf16, atol=5e-2, rtol=5e-2)
    assert jnp.allclose(out_stream, ref_bf16, atol=5e-2, rtol=5e-2)

    # Loose check against the full-f32 module semantics (bf16 rounding of the
    # big streams only; absolute error scales with |supp| ~ sqrt(N)).
    ref_f32 = adj @ (x @ weight) + bias
    assert jnp.allclose(out, ref_f32, atol=0.3, rtol=5e-2)

    # Small-graph fallback path (plain jnp, exact torch op ordering).
    n_small = 16
    x_s = jax.random.normal(kx, (n_small, in_features), dtype=jnp.float32)
    adj_s = jax.random.uniform(kadj, (n_small, n_small), dtype=jnp.float32)
    out_s = gcn_forward(x_s, weight, adj_s, bias)
    jax.block_until_ready(out_s)
    ref_s = adj_s @ (x_s @ weight) + bias
    assert jnp.allclose(out_s, ref_s, atol=1e-4, rtol=1e-4)

    print("KERNEL_OK")
</pallas_src>

<mosaic_0001>
module attributes {stable_mosaic.version = 11 : i64} {
  func.func @_gcn_kernel(%arg0: i32, %arg1: i32, %arg2: memref<128x384xf32, #tpu.memory_space<vmem>>, %arg3: memref<384x128xbf16, #tpu.memory_space<vmem>>, %arg4: memref<128x128xbf16, #tpu.memory_space<vmem>>, %arg5: memref<1x128xf32, #tpu.memory_space<vmem>>, %arg6: memref<128x128xf32, #tpu.memory_space<vmem>>, %arg7: memref<128x128xf32, #tpu.memory_space<vmem>>) attributes {dimension_semantics = [#tpu.dimension_semantics<parallel>, #tpu.dimension_semantics<arbitrary>], iteration_bounds = array<i64: 3, 1>, scalar_prefetch = 0 : i64, scratch_operands = 1 : i64, tpu.core_type = #tpu.core_type<tc>, window_params = [{transform_indices = @transform_0, window_bounds = array<i64: 128, 384>}, {pipeline_mode = #tpu.pipeline_mode<synchronous>, transform_indices = @transform_1, window_bounds = array<i64: 384, 128>}, {pipeline_mode = #tpu.pipeline_mode<synchronous>, transform_indices = @transform_2, window_bounds = array<i64: 128, 128>}, {pipeline_mode = #tpu.pipeline_mode<synchronous>, transform_indices = @transform_3, window_bounds = array<i64: 1, 128>}, {transform_indices = @transform_4, window_bounds = array<i64: 128, 128>}]} {
    %c0 = arith.constant 0 : index
    %c0_0 = arith.constant 0 : index
    %0 = vector.load %arg2[%c0, %c0_0] : memref<128x384xf32, #tpu.memory_space<vmem>>, vector<128x384xf32>
    %1 = arith.truncf %0 : vector<128x384xf32> to vector<128x384xbf16>
    %c384_i32 = arith.constant 384 : i32
    %2 = arith.muli %arg1, %c384_i32 : i32
    %3 = tpu.assume_multiple %2, 128 : i32
    %4 = arith.index_cast %3 : i32 to index
    %c0_1 = arith.constant 0 : index
    %5 = vector.load %arg3[%4, %c0_1] : memref<384x128xbf16, #tpu.memory_space<vmem>>, vector<384x128xbf16>
    %cst = arith.constant dense<0.000000e+00> : vector<128x128xf32>
    %6 = tpu.matmul %1, %5, %cst {dimension_numbers = #tpu.dot_dimension_numbers<[1], [0], [0], [1], [0, 0, 1, 1], [], []>} : vector<128x384xbf16>, vector<384x128xbf16>, vector<128x128xf32> -> vector<128x128xf32>
    %c0_i32 = arith.constant 0 : i32
    %7 = arith.cmpi eq, %arg1, %c0_i32 : i32
    %8 = arith.extui %7 : i1 to i32
    %c0_i32_2 = arith.constant 0 : i32
    %9 = arith.cmpi ne, %8, %c0_i32_2 : i32
    scf.if %9 {
      %c0_7 = arith.constant 0 : index
      %c0_8 = arith.constant 0 : index
      %16 = vector.load %arg7[%c0_7, %c0_8] : memref<128x128xf32, #tpu.memory_space<vmem>>, vector<128x128xf32>
      tpu.vector_store %arg7[%c0_7, %c0_8], %6 {strides = array<i32>} : memref<128x128xf32, #tpu.memory_space<vmem>>, vector<128x128xf32>,
    } else {
    }
    %c0_i32_3 = arith.constant 0 : i32
    %10 = arith.cmpi ne, %arg1, %c0_i32_3 : i32
    %11 = arith.extui %10 : i1 to i32
    %c0_i32_4 = arith.constant 0 : i32
    %12 = arith.cmpi ne, %11, %c0_i32_4 : i32
    scf.if %12 {
      %c0_7 = arith.constant 0 : index
      %c0_8 = arith.constant 0 : index
      %16 = vector.load %arg7[%c0_7, %c0_8] : memref<128x128xf32, #tpu.memory_space<vmem>>, vector<128x128xf32>
      %17 = arith.addf %16, %6 : vector<128x128xf32>
      %c0_9 = arith.constant 0 : index
      %c0_10 = arith.constant 0 : index
      %18 = vector.load %arg7[%c0_9, %c0_10] : memref<128x128xf32, #tpu.memory_space<vmem>>, vector<128x128xf32>
      tpu.vector_store %arg7[%c0_9, %c0_10], %17 {strides = array<i32>} : memref<128x128xf32, #tpu.memory_space<vmem>>, vector<128x128xf32>,
    } else {
    }
    %c0_i32_5 = arith.constant 0 : i32
    %13 = arith.cmpi eq, %arg1, %c0_i32_5 : i32
    %14 = arith.extui %13 : i1 to i32
    %c0_i32_6 = arith.constant 0 : i32
    %15 = arith.cmpi ne, %14, %c0_i32_6 : i32
    scf.if %15 {
      %c0_7 = arith.constant 0 : index
      %c0_8 = arith.constant 0 : index
      %16 = vector.load %arg7[%c0_7, %c0_8] : memref<128x128xf32, #tpu.memory_space<vmem>>, vector<128x128xf32>
      %17 = arith.truncf %16 : vector<128x128xf32> to vector<128x128xbf16>
      %c0_9 = arith.constant 0 : index
      %c0_10 = arith.constant 0 : index
      %18 = vector.load %arg4[%c0_9, %c0_10] : memref<128x128xbf16, #tpu.memory_space<vmem>>, vector<128x128xbf16>
      %cst_11 = arith.constant dense<0.000000e+00> : vector<128x128xf32>
      %19 = tpu.matmul %17, %18, %cst_11 {dimension_numbers = #tpu.dot_dimension_numbers<[1], [0], [0], [1], [0, 0, 1, 1], [], []>} : vector<128x128xbf16>, vector<128x128xbf16>, vector<128x128xf32> -> vector<128x128xf32>
      %c0_12 = arith.constant 0 : index
      %c0_13 = arith.constant 0 : index
      %20 = vector.load %arg5[%c0_12, %c0_13] : memref<1x128xf32, #tpu.memory_space<vmem>>, vector<1x128xf32>
      %21 = vector.broadcast %20 : vector<1x128xf32> to vector<128x128xf32>
      %22 = arith.addf %19, %21 : vector<128x128xf32>
      %c0_14 = arith.constant 0 : index
      %c0_15 = arith.constant 0 : index
      %23 = vector.load %arg6[%c0_14, %c0_15] : memref<128x128xf32, #tpu.memory_space<vmem>>, vector<128x128xf32>
      tpu.vector_store %arg6[%c0_14, %c0_15], %22 {strides = array<i32>} : memref<128x128xf32, #tpu.memory_space<vmem>>, vector<128x128xf32>,
    } else {
    }
    return
  }
  func.func @transform_0(%arg0: i32, %arg1: i32) -> (i32, i32) {
    %c0_i32 = arith.constant 0 : i32
    return %arg0, %arg1 : i32, i32
  }
  func.func @transform_1(%arg0: i32, %arg1: i32) -> (i32, i32) {
    %c0_i32 = arith.constant 0 : i32
    %c0_i32_0 = arith.constant 0 : i32
    %c0_i32_1 = arith.constant 0 : i32
    return %c0_i32, %c0_i32_0 : i32, i32
  }
  func.func @transform_2(%arg0: i32, %arg1: i32) -> (i32, i32) {
    %c0_i32 = arith.constant 0 : i32
    %c0_i32_0 = arith.constant 0 : i32
    %c0_i32_1 = arith.constant 0 : i32
    return %c0_i32, %c0_i32_0 : i32, i32
  }
  func.func @transform_3(%arg0: i32, %arg1: i32) -> (i32, i32) {
    %c0_i32 = arith.constant 0 : i32
    %c0_i32_0 = arith.constant 0 : i32
    %c0_i32_1 = arith.constant 0 : i32
    return %c0_i32, %c0_i32_0 : i32, i32
  }
  func.func @transform_4(%arg0: i32, %arg1: i32) -> (i32, i32) {
    %c0_i32 = arith.constant 0 : i32
    %c0_i32_0 = arith.constant 0 : i32
    return %arg0, %c0_i32 : i32, i32
  }
}

</mosaic_0001>

<bundles_post_ra>
// kernel: tpu_custom_call.1
= control target key start
LH: loop header
LB: loop body
LE: loop exit
PB: predicated region body
PF: predicated region fallthrough
CT: control target
= control target key end

     0   :  { %s1740_s0 = inlined_call_operand.hbm [shape: f32[384,384], index: 0, kind: input, shape index: {}]   ;;  %s1741_s1 = inlined_call_operand.hbm [shape: bf16[384,128], index: 1, kind: input, shape index: {}]   ;;  %s1742_s2 = inlined_call_operand.hbm [shape: bf16[128,128], index: 2, kind: input, shape index: {}]   ;;  %s1743_s3 = inlined_call_operand.vmem [shape: f32[1,128], index: 3, kind: input, shape index: {}]   ;;  %s1744_s4 = inlined_call_operand.hbm [shape: f32[384,128], index: 4, kind: output, shape index: {}]  }
   0x1   :  { %1745 = sst [smem:[#allocation13_spill]] %s1741_s1 }
   0x2   :  { %9 = vsyncpa [#allocation4], 0 }
   0x3   :  { %11 = vsyncpa [#allocation4 + $0x1], 0 }
   0x4   :  { %12 = vsyncpa [#allocation7], 0 }
   0x5   :  { %13 = vsyncpa [#allocation5], 0 }
   0x6   :  { %15 = vsyncpa [#allocation5 + $0x1], 0  ;;  %s1523_s15 = smov 0   ;;  %s1525_s16 = smov 0  }
   0x7   :  { %s1527_s17 = smov 0   ;;  %s1529_s18 = smov 0  }
   0x8   :  { %s1531_s19 = smov 0   ;;  %s1533_s20 = smov 0  }
   0x9 LB: > { %s1040_s21 = sadd.s32 4294967295, %s1488_s20   ;;  %s1041_s22 = sadd.s32 4294967294, %s1488_s20   ;;  %s1488_s20 = sphi %s1533_s20, %s21_s20   ;;  %s1484_s19 = sphi %s1531_s19, %s1757_s19   ;;  %s1480_s18 = sphi %s1529_s18, %s1756_s18   ;;  %s1476_s17 = sphi %s1527_s17, %s1755_s17   ;;  %s1472_s16 = sphi %s1525_s16, %s1754_s16   ;;  %s1468_s15 = sphi %s1523_s15, %s1753_s15  }
   0xa   : > { %p55_p0 = scmp.ne.s32.totalorder %s1472_s16, %s1468_s15  ;;  %p1557_p1 = scmp.eq.s32.totalorder %s1040_s21, 0 }
   0xb   : > { %p1561_p2 = scmp.eq.s32.totalorder %s1040_s21, 2  ;;  %p148_p3 = scmp.eq.s32.totalorder %s1041_s22, 2 }
   0xc   : > { %p1567_p4 = por %p1557_p1, %p55_p0  ;;  %p1042_p5 = scmp.ge.s32.totalorder %s1488_s20, 1 }
   0xd   : > { %p1572_p6 = por %p148_p3, %p55_p0  ;;  %p155_p7 = scmp.lt.s32.totalorder %s1488_s20, 4 }
   0xe   : > { %s1750_s1 = sld [smem:[#allocation13_spill]]  ;;  %s1490_s5 = smov [#allocation6]  }
   0xf   : > { %p1580_p8 = pnand %p1042_p5, %p155_p7  ;;  %s168_s6 = sshll.u32 %s1490_s5, 4  ;;  %s169_s6 = int_to_ptr.vmem [resolvable:$true] %s168_s6 }
  0x10   : > { %s180_s9 = sshll.u32 %s1742_s2, 4  ;;  %s1491_s10 = smov 64   ;;  %s181_s9 = int_to_ptr.hbm [resolvable:$true] %s180_s9 }
  0x11   : > { %p1234_p9 = pneg %p1580_p8  ;;  %s1492_s11 = smov 4  }
  0x12   : > { %s1493_s12 = smov [#allocation8]   ;;  %s33_s14 = sadd.s32 1, %s1484_s19 }
  0x13   : > { %p1235_p10 = pnand %p1234_p9, %p1557_p1  ;;  %s182_s13 = sshll.u32 %s1493_s12, 4  ;;  %s183_s13 = int_to_ptr.vmem [resolvable:$true] %s182_s13 }
  0x14   : > { %s166_s29 = sshll.u32 %s1750_s1, 4  ;;  %s42_s21 = sadd.s32 1, %s1476_s17  ;;  %s167_s29 = int_to_ptr.hbm [resolvable:$true] %s166_s29 }
  0x15   : > { %1237 = dma.hbm_to_vmem [thread:$0]  (!%p1235_p10), %s167_s29, 3072, %s169_s6, [#allocation7], %s1491_s10, %s1491_s10, %s1492_s11  }
  0x16   : > { %1240 = dma.hbm_to_vmem [thread:$0]  (!%p1235_p10), %s181_s9, 1024, %s183_s13, [#allocation7], %s1491_s10, %s1491_s10, %s1492_s11  }
  0x17   : > { %p35_p11 = scmp.ge.s32.totalorder %s33_s14, 3  ;;  %p49_p12 = scmp.ne.s32.totalorder %s1476_s17, %s1472_s16 }
  0x18   : > { %p50_p13 = scmp.eq.s32.totalorder %s1488_s20, 0  ;;  %p1251_p0 = scmp.lt.s32.totalorder %s1488_s20, 3 }
  0x19   : > { %s1759_s14 = smov (%p35_p11, %s33_s14), 0  ;;  %p1601_p5 = por %p1561_p2, %p49_p12 }
  0x1a   : > { %p51_p3 = por %p50_p13, %p49_p12  ;;  %s37_s27 = ssub.s32 %s1484_s19, %s1759_s14 }
  0x1b   : > { %s199_s28 = sand.u32 1, %s1476_s17   ;;  %p40_p7 = scmp.eq.s32.totalorder %s37_s27, 0 }
  0x1c   : > { %s1219_s29 = smul.u32 384, %s199_s28  ;;  %p1242_p9 = pnand %p1251_p0, %p51_p3 }
  0x1d   : > { %s1609_s5 = scalar_select %p40_p7, %s1476_s17, %s42_s21  }
  0x1e   : > { %s1220_s6 = smul.u32 384, %s1484_s19  ;;  %s203_s7 = scalar_lea.vmem [#allocation3], %s1219_s29 }
  0x1f   : > { %s214_s8 = sshll.u32 %s203_s7, 4  ;;  %s200_s12 = scalar_lea.sflag [#allocation4], %s199_s28  ;;  %s215_s8 = int_to_ptr.vmem [resolvable:$true] %s214_s8 }
  0x20   : > { %s211_s11 = scalar_lea.hbm %s1740_s0, %s1220_s6  ;;  %s1494_s13 = smov 384  }
  0x21   : > { %s212_s24 = sshll.u32 %s211_s11, 4  ;;  %s1495_s1 = smov 24   ;;  %s213_s24 = int_to_ptr.hbm [resolvable:$true] %s212_s24 }
  0x22   : > { %1244 = dma.hbm_to_vmem [thread:$0]  (!%p1242_p9), %s213_s24, 6144, %s215_s8, %s200_s12, %s1494_s13, %s1494_s13, %s1495_s1  }
  0x23   : > { %226 = sbr.rel (%p1580_p8) target bundleno = 479 (0x1df), region = 36  ;;  %s1618_s21 = sand.u32 (!%p1580_p8), 1, %s1472_s16  }
  0x24   : > { %s1221_s27 = smul.u32 (!%p1580_p8), 384, %s1618_s21  ;;  %s229_s29 = scalar_lea.sflag (!%p1580_p8), [#allocation4], %s1618_s21 }
  0x26   : > { %s1622_s7 = scalar_lea.vmem (!%p1580_p8), [#allocation3], %s1221_s27 }
  0x28   : > { %1455 = dma.done.wait (%p1567_p4), %s229_s29, 6144  }
  0x29   : > { %1457 = vsyncadd (%p1567_p4), %s229_s29, 4294961152 }
  0x2a   : > { %1459 = dma.done.wait (%p1557_p1), [#allocation7], 4096  }
  0x2b   : > { %1461 = vsyncadd (%p1557_p1), [#allocation7], 4294963200  ;;  %v1193_v0 = vld [vmem:[#allocation6 + $0x38] sm:$0xff]  ;;  %v1192_v3 = vld [vmem:[#allocation6 + $0x30] sm:$0xff]  ;;  %s1052_s1 = sshll.u32 %s1618_s21, 7  ;;  %s1218_s28 = sshll.u32 %s1480_s18, 7 }
  0x2c   : > { %v1201_v1 = vld [vmem:[#allocation6 + $0x78] sm:$0xff]  ;;  %540 = vmatpush.bf16.msra.mxu0 %v1193_v0  ;;  %v1200_v4 = vld [vmem:[#allocation6 + $0x70] sm:$0xff]  ;;  %v1191_v6 = vld [vmem:[#allocation6 + $0x28] sm:$0xff]  ;;  %s1684_s30 = scalar_lea.vmem [#allocation9], %s1052_s1  ;;  %s931_s9 = scalar_lea.hbm %s1744_s4, %s1218_s28 }
  0x2d   : > { %v1209_v2 = vld [vmem:[#allocation6 + $0xb8] sm:$0xff]  ;;  %589 = vmatpush.bf16.msra.mxu1 %v1201_v1  ;;  %v1208_v5 = vld [vmem:[#allocation6 + $0xb0] sm:$0xff]  ;;  %v1199_v7 = vld [vmem:[#allocation6 + $0x68] sm:$0xff]  ;;  %s932_s10 = sshll.u32 %s1684_s30, 4  ;;  %s934_s11 = sshll.u32 %s931_s9, 4  ;;  %s933_s10 = int_to_ptr.vmem [resolvable:$true] %s932_s10  ;;  %s935_s11 = int_to_ptr.hbm [resolvable:$true] %s934_s11 }
  0x2e   : > { %638 = vmatpush.bf16.msra.mxu2 %v1209_v2  ;;  %v1207_v8 = vld [vmem:[#allocation6 + $0xa8] sm:$0xff]  ;;  %v1190_v9 = vld [vmem:[#allocation6 + $0x20] sm:$0xff]  ;;  %v1189_v12 = vld [vmem:[#allocation6 + $0x18] sm:$0xff]  ;;  %s920_s24 = scalar_lea.sflag [#allocation5], %s1618_s21  ;;  %s1416_s12 = sshra.s32 %s935_s11, 4  ;;  %s1417_s12 = int_to_ptr.hbm [resolvable:$true] %s1416_s12 }
  0x2f   : > { %v1198_v10 = vld [vmem:[#allocation6 + $0x60] sm:$0xff]  ;;  %v1197_v13 = vld [vmem:[#allocation6 + $0x58] sm:$0xff]  ;;  %v1188_v15 = vld [vmem:[#allocation6 + $0x10] sm:$0xff]  ;;  %s1418_s13 = scalar_lea.hbm %s1417_s12, 128  ;;  %s1422_s29 = scalar_lea.hbm %s1744_s4, 384 }
  0x30   : > { %541 = vmatpush.bf16.msra.mxu0 %v1192_v3  ;;  %v1206_v11 = vld [vmem:[#allocation6 + $0xa0] sm:$0xff]  ;;  %v1205_v14 = vld [vmem:[#allocation6 + $0x98] sm:$0xff]  ;;  %v1196_v16 = vld [vmem:[#allocation6 + $0x50] sm:$0xff]  ;;  %p1419_p1 = scmp.ne.s32.totalorder %s1417_s12, %s1418_s13  ;;  %p1423_p8 = scmp.lt.s32.totalorder %s1417_s12, %s1744_s4 }
  0x31   : > { %590 = vmatpush.bf16.msra.mxu1 %v1200_v4  ;;  %v1204_v17 = vld [vmem:[#allocation6 + $0x90] sm:$0xff]  ;;  %v1187_v18 = vld [vmem:[#allocation6 + $0x8] sm:$0xff]  ;;  %v1186_v21 = vld [vmem:[#allocation6] sm:$0xff]  ;;  %p1424_p10 = scmp.lt.s32.totalorder %s1422_s29, %s1418_s13 }
  0x32   : > { %639 = vmatpush.bf16.msra.mxu2 %v1208_v5  ;;  %v1195_v19 = vld [vmem:[#allocation6 + $0x48] sm:$0xff]  ;;  %v1194_v22 = vld [vmem:[#allocation6 + $0x40] sm:$0xff]  ;;  %v274_v24 = vld [vmem:[%s1622_s7 + $0x18] sm:$0xff]  ;;  %p1420_p2 = pnand %p1419_p1, %p1601_p5 }
  0x33   : > { %v1203_v20 = vld [vmem:[#allocation6 + $0x88] sm:$0xff]  ;;  %v271_v23 = vld [vmem:[%s1622_s7] sm:$0xff]  ;;  %v273_v28 = vld [vmem:[%s1622_s7 + $0x10] sm:$0xff]  ;;  %p1425_p11 = por %p1424_p10, %p1423_p8 }
  0x34   : > { %542 = vmatpush.bf16.msra.mxu0 %v1191_v6  ;;  %v272_v25 = vld [vmem:[%s1622_s7 + $0x8] sm:$0xff]  ;;  %v275_v26 = vld [vmem:[%s1622_s7 + $0x20] sm:$0xff]  ;;  %v319_v30 = vpack.c.bf16 %v274_v24, %v271_v23  ;;  %v277_v33 = vld [vmem:[%s1622_s7 + $0x30] sm:$0xff]  ;;  %p1421_p4 = pneg %p1420_p2 }
  0x35   : > { %591 = vmatpush.bf16.msra.mxu1 %v1199_v7  ;;  %v1202_v27 = vld [vmem:[#allocation6 + $0x80] sm:$0xff]  ;;  %v276_v29 = vld [vmem:[%s1622_s7 + $0x28] sm:$0xff]  ;;  %v320_v31 = vpack.c.bf16 %v275_v26, %v272_v25  ;;  %v278_v35 = vld [vmem:[%s1622_s7 + $0x38] sm:$0xff] }
  0x36   : > { %640 = vmatpush.bf16.msra.mxu2 %v1207_v8  ;;  %v321_v32 = vpack.c.bf16 %v276_v29, %v273_v28  ;;  %v280_v34 = vld [vmem:[%s1622_s7 + $0x48] sm:$0xff]  ;;  %v281_v36 = vld [vmem:[%s1622_s7 + $0x50] sm:$0xff]  ;;  %v279_v37 = vld [vmem:[%s1622_s7 + $0x40] sm:$0xff]  ;;  %p1426_p12 = pnand %p1425_p11, %p1421_p4 }
  0x37   : > { %v282_v38 = vld [vmem:[%s1622_s7 + $0x58] sm:$0xff]  ;;  %v322_v39 = vpack.c.bf16 %v280_v34, %v277_v33  ;;  %v323_v40 = vpack.c.bf16 %v281_v36, %v278_v35  ;;  %v283_v42 = vld [vmem:[%s1622_s7 + $0x60] sm:$0xff]  ;;  %v284_v44 = vld [vmem:[%s1622_s7 + $0x68] sm:$0xff] }
  0x38   : > { %543 = vmatpush.bf16.msra.mxu0 %v1190_v9  ;;  %v324_v41 = vpack.c.bf16 %v282_v38, %v279_v37  ;;  %v286_v43 = vld [vmem:[%s1622_s7 + $0x78] sm:$0xff]  ;;  %v287_v45 = vld [vmem:[%s1622_s7 + $0x80] sm:$0xff]  ;;  %v285_v46 = vld [vmem:[%s1622_s7 + $0x70] sm:$0xff] }
  0x39   : > { %592 = vmatpush.bf16.msra.mxu1 %v1198_v10  ;;  %v288_v47 = vld [vmem:[%s1622_s7 + $0x88] sm:$0xff]  ;;  %v325_v48 = vpack.c.bf16 %v286_v43, %v283_v42  ;;  %v326_v49 = vpack.c.bf16 %v287_v45, %v284_v44  ;;  %v289_v51 = vld [vmem:[%s1622_s7 + $0x90] sm:$0xff]  ;;  %v290_v53 = vld [vmem:[%s1622_s7 + $0x98] sm:$0xff] }
  0x3a   : > { %641 = vmatpush.bf16.msra.mxu2 %v1206_v11  ;;  %v327_v50 = vpack.c.bf16 %v288_v47, %v285_v46  ;;  %v292_v52 = vld [vmem:[%s1622_s7 + $0xa8] sm:$0xff]  ;;  %v293_v54 = vld [vmem:[%s1622_s7 + $0xb0] sm:$0xff]  ;;  %v291_v55 = vld [vmem:[%s1622_s7 + $0xa0] sm:$0xff] }
  0x3b   : > { %v294_v56 = vld [vmem:[%s1622_s7 + $0xb8] sm:$0xff]  ;;  %v328_v57 = vpack.c.bf16 %v292_v52, %v289_v51  ;;  %v329_v58 = vpack.c.bf16 %v293_v54, %v290_v53  ;;  %v295_v60 = vld [vmem:[%s1622_s7 + $0xc0] sm:$0xff]  ;;  %v296_v62 = vld [vmem:[%s1622_s7 + $0xc8] sm:$0xff] }
  0x3c   : > { %544 = vmatpush.bf16.msra.mxu0 %v1189_v12  ;;  %v330_v59 = vpack.c.bf16 %v294_v56, %v291_v55  ;;  %v298_v61 = vld [vmem:[%s1622_s7 + $0xd8] sm:$0xff]  ;;  %v299_v63 = vld [vmem:[%s1622_s7 + $0xe0] sm:$0xff]  ;;  %v297_v0 = vld [vmem:[%s1622_s7 + $0xd0] sm:$0xff] }
  0x3d   : > { %593 = vmatpush.bf16.msra.mxu1 %v1197_v13  ;;  %v300_v1 = vld [vmem:[%s1622_s7 + $0xe8] sm:$0xff]  ;;  %v331_v2 = vpack.c.bf16 %v298_v61, %v295_v60  ;;  %v332_v3 = vpack.c.bf16 %v299_v63, %v296_v62  ;;  %v301_v5 = vld [vmem:[%s1622_s7 + $0xf0] sm:$0xff]  ;;  %v302_v7 = vld [vmem:[%s1622_s7 + $0xf8] sm:$0xff] }
  0x3e   : > { %642 = vmatpush.bf16.msra.mxu2 %v1205_v14  ;;  %v333_v4 = vpack.c.bf16 %v300_v1, %v297_v0  ;;  %v304_v6 = vld [vmem:[%s1622_s7 + $0x108] sm:$0xff]  ;;  %v305_v8 = vld [vmem:[%s1622_s7 + $0x110] sm:$0xff]  ;;  %v303_v9 = vld [vmem:[%s1622_s7 + $0x100] sm:$0xff] }
  0x3f   : > { %v306_v10 = vld [vmem:[%s1622_s7 + $0x118] sm:$0xff]  ;;  %v334_v11 = vpack.c.bf16 %v304_v6, %v301_v5  ;;  %v335_v12 = vpack.c.bf16 %v305_v8, %v302_v7  ;;  %v1214_v25 = vld [vmem:[#allocation8 + $0x20] sm:$0xff]  ;;  %v1212_v28 = vld [vmem:[#allocation8 + $0x10] sm:$0xff] }
  0x40   : > { %545 = vmatpush.bf16.msra.mxu0 %v1188_v15  ;;  %v336_v13 = vpack.c.bf16 %v306_v10, %v303_v9  ;;  %v1217_v14 = vld [vmem:[#allocation8 + $0x38] sm:$0xff]  ;;  %v1216_v15 = vld [vmem:[#allocation8 + $0x30] sm:$0xff]  ;;  %v1211_v29 = vld [vmem:[#allocation8 + $0x8] sm:$0xff] }
  0x41   : > { %594 = vmatpush.bf16.msra.mxu1 %v1196_v16  ;;  %854 = vmatpush.bf16.msra.mxu3 %v1217_v14  ;;  %v1215_v16 = vld [vmem:[#allocation8 + $0x28] sm:$0xff]  ;;  %v317_v33 = vld [vmem:[%s1622_s7 + $0x170] sm:$0xff]  ;;  %v315_v34 = vld [vmem:[%s1622_s7 + $0x160] sm:$0xff] }
  0x42   : > { %643 = vmatpush.bf16.msra.mxu2 %v1204_v17  ;;  %v307_v17 = vld [vmem:[%s1622_s7 + $0x120] sm:$0xff]  ;;  %v318_v35 = vld [vmem:[%s1622_s7 + $0x178] sm:$0xff] }
  0x43   : > { %v1210_v38 = vld [vmem:[#allocation8] sm:$0xff] }
  0x44   : > { %546 = vmatpush.bf16.msra.mxu0 %v1187_v18  ;;  %v310_v18 = vld [vmem:[%s1622_s7 + $0x138] sm:$0xff] }
  0x45   : > { %595 = vmatpush.bf16.msra.mxu1 %v1195_v19  ;;  %855 = vmatpush.bf16.msra.mxu3 %v1216_v15  ;;  %v308_v19 = vld [vmem:[%s1622_s7 + $0x128] sm:$0xff]  ;;  %v337_v23 = vpack.c.bf16 %v310_v18, %v307_v17 }
  0x46   : > { %644 = vmatpush.bf16.msra.mxu2 %v1203_v20  ;;  %v311_v20 = vld [vmem:[%s1622_s7 + $0x140] sm:$0xff] }
  0x47   : > { %v338_v24 = vpack.c.bf16 %v311_v20, %v308_v19 }
  0x48   : > { %547 = vmatpush.bf16.msra.mxu0 %v1186_v21  ;;  %v309_v21 = vld [vmem:[%s1622_s7 + $0x130] sm:$0xff] }
  0x49   : > { %596 = vmatpush.bf16.msra.mxu1 %v1194_v22  ;;  %v312_v22 = vld [vmem:[%s1622_s7 + $0x148] sm:$0xff]  ;;  %856 = vmatpush.bf16.msra.mxu3 %v1215_v16 }
  0x4a   : > { %645 = vmatpush.bf16.msra.mxu2 %v1202_v27  ;;  %v339_v26 = vpack.c.bf16 %v312_v22, %v309_v21  ;;  %v1213_v27 = vld [vmem:[#allocation8 + $0x18] sm:$0xff] }
  0x4b   : > { %548 = vmatmul.bf16.vlgmr.msra.gmra.mxu0 %v319_v30  ;;  %v313_v30 = vld [vmem:[%s1622_s7 + $0x150] sm:$0xff] }
  0x4c   : > { %597 = vmatmul.bf16.vlgmr.msra.gmra.mxu1 %v320_v31  ;;  %v316_v31 = vld [vmem:[%s1622_s7 + $0x168] sm:$0xff] }
  0x4d   : > { %646 = vmatmul.bf16.vlgmr.msra.gmra.mxu2 %v321_v32  ;;  %857 = vmatpush.bf16.msra.mxu3 %v1214_v25  ;;  %v314_v32 = vld [vmem:[%s1622_s7 + $0x158] sm:$0xff]  ;;  %v340_v36 = vpack.c.bf16 %v316_v31, %v313_v30 }
  0x4e   : > { %v341_v37 = vpack.c.bf16 %v317_v33, %v314_v32 }
  0x51   : > { %858 = vmatpush.bf16.msra.mxu3 %v1213_v27 }
  0x55   : > { %859 = vmatpush.bf16.msra.mxu3 %v1212_v28 }
  0x59   : > { %860 = vmatpush.bf16.msra.mxu3 %v1211_v29 }
  0x5b   : > { %553 = vmatmul.bf16.gmra.mxu0 %v322_v39  ;;  %v342_v39 = vpack.c.bf16 %v318_v35, %v315_v34 }
  0x5c   : > { %602 = vmatmul.bf16.gmra.mxu1 %v323_v40 }
  0x5d   : > { %651 = vmatmul.bf16.gmra.mxu2 %v324_v41  ;;  %861 = vmatpush.bf16.msra.mxu3 %v1210_v38 }
  0x6b   : > { %558 = vmatmul.bf16.gmra.mxu0 %v325_v48 }
  0x6c   : > { %607 = vmatmul.bf16.gmra.mxu1 %v326_v49 }
  0x6d   : > { %656 = vmatmul.bf16.gmra.mxu2 %v327_v50 }
  0x7b   : > { %563 = vmatmul.bf16.gmra.mxu0 %v328_v57 }
  0x7c   : > { %612 = vmatmul.bf16.gmra.mxu1 %v329_v58 }
  0x7d   : > { %661 = vmatmul.bf16.gmra.mxu2 %v330_v59 }
  0x8b   : > { %568 = vmatmul.bf16.gmra.mxu0 %v331_v2 }
  0x8c   : > { %617 = vmatmul.bf16.gmra.mxu1 %v332_v3 }
  0x8d   : > { %666 = vmatmul.bf16.gmra.mxu2 %v333_v4 }
  0x9b   : > { %573 = vmatmul.bf16.gmra.mxu0 %v334_v11 }
  0x9c   : > { %622 = vmatmul.bf16.gmra.mxu1 %v335_v12 }
  0x9d   : > { %671 = vmatmul.bf16.gmra.mxu2 %v336_v13 }
  0xab   : > { %578 = vmatmul.bf16.gmra.mxu0 %v337_v23 }
  0xac   : > { %627 = vmatmul.bf16.gmra.mxu1 %v338_v24 }
  0xad   : > { %676 = vmatmul.bf16.gmra.mxu2 %v339_v26 }
  0xbb   : > { %583 = vmatmul.bf16.gmra.mxu0 %v340_v36 }
  0xbc   : > { %632 = vmatmul.bf16.gmra.mxu1 %v341_v37 }
  0xbd   : > { %681 = vmatmul.bf16.gmra.mxu2 %v342_v39 }
  0xc8   : > { %v549_v40 = vpop.f32.mrf.mxu0 }
  0xc9   : > { %v598_v41 = vpop.f32.mrf.mxu1 }
  0xca   : > { %v599_v45 = vadd.f32 %v598_v41, %v549_v40 }
  0xd0   : > { %v647_v42 = vpop.f32.mrf.mxu2  ;;  %v551_v43 = vpop.f32.mrf.mxu0 }
  0xd1   : > { %v600_v44 = vpop.f32.mrf.mxu1  ;;  %v648_v48 = vadd.f32 %v647_v42, %v599_v45 }
  0xd2   : > { %v601_v46 = vadd.f32 %v600_v44, %v551_v43 }
  0xd8   : > { %v649_v47 = vpop.f32.mrf.mxu2  ;;  %v554_v50 = vpop.f32.mrf.mxu0 }
  0xd9   : > { %v650_v49 = vadd.f32 %v649_v47, %v601_v46  ;;  %v603_v51 = vpop.f32.mrf.mxu1 }
  0xda   : > { %v604_v56 = vadd.f32 %v603_v51, %v554_v50 }
  0xdb   : > { %v778_v52 = vpack.c.bf16 %v650_v49, %v648_v48 }
  0xdd   : > { %862 = vmatmul.bf16.vlgmr.msra.gmra.mxu3 %v778_v52 }
  0xe0   : > { %v652_v53 = vpop.f32.mrf.mxu2  ;;  %v556_v54 = vpop.f32.mrf.mxu0 }
  0xe1   : > { %v605_v55 = vpop.f32.mrf.mxu1  ;;  %v653_v59 = vadd.f32 %v652_v53, %v604_v56 }
  0xe2   : > { %v606_v57 = vadd.f32 %v605_v55, %v556_v54 }
  0xe8   : > { %v654_v58 = vpop.f32.mrf.mxu2  ;;  %v559_v61 = vpop.f32.mrf.mxu0 }
  0xe9   : > { %v655_v60 = vadd.f32 %v654_v58, %v606_v57  ;;  %v608_v62 = vpop.f32.mrf.mxu1 }
  0xea   : > { %v609_v3 = vadd.f32 %v608_v62, %v559_v61 }
  0xeb   : > { %v779_v63 = vpack.c.bf16 %v655_v60, %v653_v59 }
  0xed   : > { %867 = vmatmul.bf16.gmra.mxu3 %v779_v63 }
  0xf0   : > { %v657_v0 = vpop.f32.mrf.mxu2  ;;  %v561_v1 = vpop.f32.mrf.mxu0 }
  0xf1   : > { %v610_v2 = vpop.f32.mrf.mxu1  ;;  %v658_v6 = vadd.f32 %v657_v0, %v609_v3  ;;  %v1311_v0 = vld [vmem:[%s1743_s3] ss:$0 sm:$0xff] }
  0xf2   : > { %v611_v4 = vadd.f32 %v610_v2, %v561_v1 }
  0xf8   : > { %v659_v5 = vpop.f32.mrf.mxu2  ;;  %v564_v8 = vpop.f32.mrf.mxu0 }
  0xf9   : > { %v660_v7 = vadd.f32 %v659_v5, %v611_v4  ;;  %v613_v9 = vpop.f32.mrf.mxu1 }
  0xfa   : > { %v614_v14 = vadd.f32 %v613_v9, %v564_v8 }
  0xfb   : > { %v780_v10 = vpack.c.bf16 %v660_v7, %v658_v6 }
  0xfd   : > { %872 = vmatmul.bf16.gmra.mxu3 %v780_v10 }
 0x100   : > { %v662_v11 = vpop.f32.mrf.mxu2  ;;  %v566_v12 = vpop.f32.mrf.mxu0 }
 0x101   : > { %v615_v13 = vpop.f32.mrf.mxu1  ;;  %v663_v17 = vadd.f32 %v662_v11, %v614_v14 }
 0x102   : > { %v616_v15 = vadd.f32 %v615_v13, %v566_v12 }
 0x108   : > { %v664_v16 = vpop.f32.mrf.mxu2  ;;  %v569_v19 = vpop.f32.mrf.mxu0 }
 0x109   : > { %v665_v18 = vadd.f32 %v664_v16, %v616_v15  ;;  %v618_v20 = vpop.f32.mrf.mxu1 }
 0x10a   : > { %v619_v25 = vadd.f32 %v618_v20, %v569_v19 }
 0x10b   : > { %v781_v21 = vpack.c.bf16 %v665_v18, %v663_v17 }
 0x10d   : > { %877 = vmatmul.bf16.gmra.mxu3 %v781_v21 }
 0x110   : > { %v667_v22 = vpop.f32.mrf.mxu2  ;;  %v571_v23 = vpop.f32.mrf.mxu0 }
 0x111   : > { %v620_v24 = vpop.f32.mrf.mxu1  ;;  %v668_v28 = vadd.f32 %v667_v22, %v619_v25 }
 0x112   : > { %v621_v26 = vadd.f32 %v620_v24, %v571_v23 }
 0x118   : > { %v669_v27 = vpop.f32.mrf.mxu2  ;;  %v574_v30 = vpop.f32.mrf.mxu0 }
 0x119   : > { %v670_v29 = vadd.f32 %v669_v27, %v621_v26  ;;  %v623_v31 = vpop.f32.mrf.mxu1 }
 0x11a   : > { %v624_v36 = vadd.f32 %v623_v31, %v574_v30 }
 0x11b   : > { %v782_v32 = vpack.c.bf16 %v670_v29, %v668_v28 }
 0x11d   : > { %882 = vmatmul.bf16.gmra.mxu3 %v782_v32 }
 0x120   : > { %v672_v33 = vpop.f32.mrf.mxu2  ;;  %v576_v34 = vpop.f32.mrf.mxu0 }
 0x121   : > { %v625_v35 = vpop.f32.mrf.mxu1  ;;  %v673_v39 = vadd.f32 %v672_v33, %v624_v36 }
 0x122   : > { %v626_v37 = vadd.f32 %v625_v35, %v576_v34 }
 0x128   : > { %v674_v38 = vpop.f32.mrf.mxu2  ;;  %v579_v41 = vpop.f32.mrf.mxu0 }
 0x129   : > { %v675_v40 = vadd.f32 %v674_v38, %v626_v37  ;;  %v628_v42 = vpop.f32.mrf.mxu1 }
 0x12a   : > { %v629_v47 = vadd.f32 %v628_v42, %v579_v41 }
 0x12b   : > { %v783_v43 = vpack.c.bf16 %v675_v40, %v673_v39 }
 0x12d   : > { %887 = vmatmul.bf16.gmra.mxu3 %v783_v43 }
 0x130   : > { %v677_v44 = vpop.f32.mrf.mxu2  ;;  %v581_v45 = vpop.f32.mrf.mxu0 }
 0x131   : > { %v630_v46 = vpop.f32.mrf.mxu1  ;;  %v678_v50 = vadd.f32 %v677_v44, %v629_v47 }
 0x132   : > { %v631_v48 = vadd.f32 %v630_v46, %v581_v45 }
 0x138   : > { %v679_v49 = vpop.f32.mrf.mxu2  ;;  %v584_v52 = vpop.f32.mrf.mxu0 }
 0x139   : > { %v680_v51 = vadd.f32 %v679_v49, %v631_v48  ;;  %v633_v53 = vpop.f32.mrf.mxu1 }
 0x13a   : > { %v634_v58 = vadd.f32 %v633_v53, %v584_v52 }
 0x13b   : > { %v784_v54 = vpack.c.bf16 %v680_v51, %v678_v50 }
 0x13d   : > { %892 = vmatmul.bf16.gmra.mxu3 %v784_v54 }
 0x140   : > { %v682_v55 = vpop.f32.mrf.mxu2  ;;  %v586_v56 = vpop.f32.mrf.mxu0 }
 0x141   : > { %v635_v57 = vpop.f32.mrf.mxu1  ;;  %v683_v61 = vadd.f32 %v682_v55, %v634_v58 }
 0x142   : > { %v636_v59 = vadd.f32 %v635_v57, %v586_v56 }
 0x148   : > { %v684_v60 = vpop.f32.mrf.mxu2 }
 0x149   : > { %v685_v62 = vadd.f32 %v684_v60, %v636_v59 }
 0x14b   : > { %v785_v63 = vpack.c.bf16 %v685_v62, %v683_v61 }
 0x14d   : > { %897 = vmatmul.bf16.gmra.mxu3 %v785_v63 }
 0x160   : > { %v863_v1 = vpop.f32.mrf.mxu3 }
 0x161   : > { %v864_v2 = vadd.f32 %v1311_v0, %v863_v1 }
 0x163   : > { %903 = vst [vmem:[%s1684_s30] sm:$0xff] %v864_v2 }
 0x168   : > { %v865_v3 = vpop.f32.mrf.mxu3 }
 0x169   : > { %v866_v4 = vadd.f32 %v1311_v0, %v865_v3 }
 0x16b   : > { %904 = vst [vmem:[%s1684_s30 + $0x8] sm:$0xff] %v866_v4 }
 0x170   : > { %v868_v5 = vpop.f32.mrf.mxu3 }
 0x171   : > { %v869_v6 = vadd.f32 %v1311_v0, %v868_v5 }
 0x173   : > { %905 = vst [vmem:[%s1684_s30 + $0x10] sm:$0xff] %v869_v6 }
 0x178   : > { %v870_v7 = vpop.f32.mrf.mxu3 }
 0x179   : > { %v871_v8 = vadd.f32 %v1311_v0, %v870_v7 }
 0x17b   : > { %906 = vst [vmem:[%s1684_s30 + $0x18] sm:$0xff] %v871_v8 }
 0x180   : > { %v873_v9 = vpop.f32.mrf.mxu3 }
 0x181   : > { %v874_v10 = vadd.f32 %v1311_v0, %v873_v9 }
 0x183   : > { %907 = vst [vmem:[%s1684_s30 + $0x20] sm:$0xff] %v874_v10 }
 0x188   : > { %v875_v11 = vpop.f32.mrf.mxu3 }
 0x189   : > { %v876_v12 = vadd.f32 %v1311_v0, %v875_v11 }
 0x18b   : > { %908 = vst [vmem:[%s1684_s30 + $0x28] sm:$0xff] %v876_v12 }
 0x190   : > { %v878_v13 = vpop.f32.mrf.mxu3 }
 0x191   : > { %v879_v14 = vadd.f32 %v1311_v0, %v878_v13 }
 0x193   : > { %909 = vst [vmem:[%s1684_s30 + $0x30] sm:$0xff] %v879_v14 }
 0x198   : > { %v880_v15 = vpop.f32.mrf.mxu3 }
 0x199   : > { %v881_v16 = vadd.f32 %v1311_v0, %v880_v15 }
 0x19b   : > { %910 = vst [vmem:[%s1684_s30 + $0x38] sm:$0xff] %v881_v16 }
 0x1a0   : > { %v883_v17 = vpop.f32.mrf.mxu3 }
 0x1a1   : > { %v884_v18 = vadd.f32 %v1311_v0, %v883_v17 }
 0x1a3   : > { %911 = vst [vmem:[%s1684_s30 + $0x40] sm:$0xff] %v884_v18 }
 0x1a8   : > { %v885_v19 = vpop.f32.mrf.mxu3 }
 0x1a9   : > { %v886_v20 = vadd.f32 %v1311_v0, %v885_v19 }
 0x1ab   : > { %912 = vst [vmem:[%s1684_s30 + $0x48] sm:$0xff] %v886_v20 }
 0x1b0   : > { %v888_v21 = vpop.f32.mrf.mxu3 }
 0x1b1   : > { %v889_v22 = vadd.f32 %v1311_v0, %v888_v21 }
 0x1b3   : > { %913 = vst [vmem:[%s1684_s30 + $0x50] sm:$0xff] %v889_v22 }
 0x1b8   : > { %v890_v23 = vpop.f32.mrf.mxu3 }
 0x1b9   : > { %v891_v24 = vadd.f32 %v1311_v0, %v890_v23 }
 0x1bb   : > { %914 = vst [vmem:[%s1684_s30 + $0x58] sm:$0xff] %v891_v24 }
 0x1c0   : > { %v893_v25 = vpop.f32.mrf.mxu3 }
 0x1c1   : > { %v894_v26 = vadd.f32 %v1311_v0, %v893_v25 }
 0x1c3   : > { %915 = vst [vmem:[%s1684_s30 + $0x60] sm:$0xff] %v894_v26 }
 0x1c8   : > { %v895_v27 = vpop.f32.mrf.mxu3 }
 0x1c9   : > { %v896_v28 = vadd.f32 %v1311_v0, %v895_v27 }
 0x1cb   : > { %916 = vst [vmem:[%s1684_s30 + $0x68] sm:$0xff] %v896_v28 }
 0x1d0   : > { %v898_v29 = vpop.f32.mrf.mxu3 }
 0x1d1   : > { %v899_v30 = vadd.f32 %v1311_v0, %v898_v29 }
 0x1d3   : > { %917 = vst [vmem:[%s1684_s30 + $0x70] sm:$0xff] %v899_v30 }
 0x1d8   : > { %v900_v31 = vpop.f32.mrf.mxu3 }
 0x1d9   : > { %v901_v32 = vadd.f32 %v1311_v0, %v900_v31 }
 0x1db   : > { %918 = vst [vmem:[%s1684_s30 + $0x78] sm:$0xff] %v901_v32 }
 0x1dc   : > { %1429 = shalt.err (!%p1426_p12)
}
 0x1dd   : > { %s1496_s21 = smov 128   ;;  %s1497_s23 = smov 8  }
 0x1de   : > { %1232 = dma.vmem_to_hbm [thread:$0]  (%p1601_p5), %s933_s10, 2048, %s935_s11, %s920_s24, %s1496_s21, %s1496_s21, %s1497_s23  }
 0x1df PF: > { %p1254_p13 = scmp.ge.s32.totalorder %s1488_s20, 2  ;;  %s949_s25 = sand.u32 1, %s1468_s15  }
 0x1e0   : > { %s950_s30 = scalar_lea.sflag [#allocation5], %s949_s25 }
 0x1e1   : > { %p1246_p0 = pnand %p1254_p13, %p1572_p6 }
 0x1e3   : > { %p1247_p3 = pneg %p1246_p0 }
 0x1e5   : > { %1463 = dma.done.wait (%p1247_p3), %s950_s30, 2048  }
 0x1e6   : > { %1465 = vsyncadd (%p1247_p3), %s950_s30, 4294965248  ;;  %s21_s20 = sadd.s32 1, %s1488_s20   ;;  %s1753_s15 = smov %s1472_s16 }
 0x1e7   : > { %p18_p7 = scmp.ge.s32.totalorder %s21_s20, 5   ;;  %s1754_s16 = smov %s1476_s17 }
 0x1e8   : > { %s1755_s17 = smov %s1609_s5  ;;  %s1756_s18 = smov %s1484_s19 }
 0x1e9   : > { %s1757_s19 = smov %s1759_s14  ;;  %20 = sbr.rel (!%p18_p7) target bundleno = 9 (0x9), region = 102 }
 0x1ee   :  { %956 = vsyncpa [#allocation4], 1 }
 0x1ef   :  { %958 = vsyncpa [#allocation4 + $0x1], 1 }
 0x1f0   :  { %959 = vsyncpa [#allocation7], 1 }
 0x1f1   :  { %960 = vsyncpa [#allocation5], 1 }
 0x1f2   :  { %962 = vsyncpa [#allocation5 + $0x1], 1 }

</bundles_post_ra>
